<compile_context>
chip_gen: v5e
topology: v5e:2x2
jax: 0.10.0
libtpu: 0.0.40
codegen_flags: <defaults>
</compile_context>

<pallas_src>
import functools

import jax
import jax.numpy as jnp
from jax.experimental import pallas as pl
from jax.experimental.pallas import tpu as pltpu


def _cdiv(a: int, b: int) -> int:
    return (a + b - 1) // b


def _round_up(x: int, m: int) -> int:
    return ((x + m - 1) // m) * m


def gnlr_kernel(x_ref, w01_ref, b01_ref, w2_ref, b2_ref, o_ref):
    """One lane-packed batch tile:  y = tanh(x @ W01 + b01) @ W2' + b2'."""
    x = x_ref[...]                                                # (tm, P*n_in)
    # fused (input affine + first MLP layer), f32 accumulation on the MXU,
    # tanh on the EUP in f32
    h = jnp.tanh(
        jnp.dot(x, w01_ref[...], preferred_element_type=jnp.float32)
        + b01_ref[...])                                           # (tm, P*hidden)
    # second MLP layer with output scale/bias folded in
    y = jnp.dot(h.astype(w2_ref.dtype), w2_ref[...],
                preferred_element_type=jnp.float32) + b2_ref[...]
    o_ref[...] = y.astype(o_ref.dtype)


@functools.partial(jax.jit, static_argnames=("tile_m", "use_bf16", "out_dtype"))
def gnlr_forward(x, w, s_in, b_in, w1, b1, w2, b2, s_out, b_out,
                 *, tile_m=2048, use_bf16=None, out_dtype=jnp.float32):
    """E(y|x) for the GNLR model, lane-packed and tiled over the batch axis.

    tile_m is measured in *packed* rows (each packed row = `pack` samples).
    """
    n_smps, n_in = x.shape
    hidden = w1.shape[1]
    q = w2.shape[1]

    if use_bf16 is None:                 # shape is static -> static choice
        use_bf16 = n_smps >= 4096
    mm_dtype = jnp.bfloat16 if use_bf16 else jnp.float32
    hi = jax.lax.Precision.HIGHEST

    # ---- one-time algebraic folds (all in f32, outside the kernel) --------
    #   z = s_in*(x@w)+b_in ; h = tanh(z@W1+b1)
    #     ==> h = tanh(x @ W01 + b01),  W01 = (w*s_in)@W1, b01 = b_in@W1 + b1
    #   y = s_out*(h@W2+b2)+b_out       ==> y = h @ W2' + b2'
    w_f = w.astype(jnp.float32) * s_in.astype(jnp.float32)[None, :]
    w01 = jnp.dot(w_f, w1.astype(jnp.float32), precision=hi)          # (n_in, hidden)
    b01 = jnp.dot(b_in.astype(jnp.float32), w1.astype(jnp.float32),
                  precision=hi) + b1.astype(jnp.float32)              # (hidden,)
    w2f = w2.astype(jnp.float32) * s_out.astype(jnp.float32)[None, :]  # (hidden, q)
    b2f = (b2 * s_out + b_out).astype(jnp.float32)                     # (q,)

    # ---- lane packing: `pack` samples side by side on the lane axis -------
    md = max(n_in, q, 1)
    pack = 128 // md if (128 % md == 0 and hidden * (128 // md) <= 4096) else 1
    eye = jnp.eye(pack, dtype=jnp.float32)
    w01_bd = jnp.kron(eye, w01)                       # (pack*n_in, pack*hidden)
    w2_bd = jnp.kron(eye, w2f)                        # (pack*hidden, pack*q)
    b01_bd = jnp.tile(b01, pack).reshape(1, pack * hidden)
    b2_bd = jnp.tile(b2f, pack).reshape(1, pack * q)

    # ---- batch tiling over packed rows -------------------------------------
    rows = _cdiv(n_smps, pack)                        # packed rows needed
    grid_len = _cdiv(rows, tile_m)
    if grid_len > 1 and grid_len % 2:
        grid_len += 1            # even grid -> both v7x TensorCores stay busy
    tm = _round_up(_cdiv(rows, grid_len), 8)          # sublane-aligned tile
    rows_pad = tm * grid_len
    n_pad = rows_pad * pack

    x_k = x.astype(mm_dtype)
    if n_pad != n_smps:
        x_k = jnp.pad(x_k, ((0, n_pad - n_smps), (0, 0)))  # garbage rows sliced off
    x_p = x_k.reshape(rows_pad, pack * n_in)          # free, contiguous reshape

    w01_k = w01_bd.astype(mm_dtype)                   # cast only AFTER the f32 fold
    w2_k = w2_bd.astype(mm_dtype)

    in_bytes = jnp.dtype(mm_dtype).itemsize
    out_bytes = jnp.dtype(out_dtype).itemsize
    cost = pl.CostEstimate(
        flops=2 * rows_pad * (pack * n_in * pack * hidden
                              + pack * hidden * pack * q),
        transcendentals=rows_pad * pack * hidden,
        bytes_accessed=(x_p.size * in_bytes
                        + rows_pad * pack * q * out_bytes
                        + (w01_k.size + w2_k.size) * in_bytes
                        + (b01_bd.size + b2_bd.size) * 4),
    )

    full = lambda shape: pl.BlockSpec(shape, lambda i: (0, 0))  # resident, DMA'd once

    y_p = pl.pallas_call(
        gnlr_kernel,
        out_shape=jax.ShapeDtypeStruct((rows_pad, pack * q), out_dtype),
        grid_spec=pltpu.PrefetchScalarGridSpec(
            num_scalar_prefetch=0,
            grid=(grid_len,),
            in_specs=[
                pl.BlockSpec((tm, pack * n_in), lambda i: (i, 0)),  # x (streamed)
                full((pack * n_in, pack * hidden)),                 # W01 block-diag
                full((1, pack * hidden)),                           # b01 (tiled)
                full((pack * hidden, pack * q)),                    # W2' block-diag
                full((1, pack * q)),                                # b2'  (tiled)
            ],
            out_specs=pl.BlockSpec((tm, pack * q), lambda i: (i, 0)),
        ),
        compiler_params=pltpu.CompilerParams(
            dimension_semantics=("parallel",),
            vmem_limit_bytes=32 * 1024 * 1024),
        cost_estimate=cost,
    )(x_p, w01_k, b01_bd, w2_k, b2_bd)

    y = y_p.reshape(n_pad, q)                          # unpack lanes -> rows
    return y[:n_smps] if n_pad != n_smps else y


def gnlr_forward_ref(x, w, s_in, b_in, w1, b1, w2, b2, s_out, b_out):
    """Pure-JAX reference mirroring the PyTorch module's cond_mean."""
    z = s_in * (x @ w) + b_in
    l = jnp.tanh(z @ w1 + b1) @ w2 + b2
    return s_out * l + b_out


if __name__ == "__main__":
    # small shapes implied by the module's forward:
    #   n_smps x n_input_vars -> p (low-d) -> hidden -> q (predicted vars)
    n_in, p, hidden, q = 16, 8, 32, 16

    key = jax.random.PRNGKey(0)
    ks = jax.random.split(key, 10)
    w     = jax.random.normal(ks[1], (n_in, p), jnp.float32) * 0.3
    s_in  = jax.random.normal(ks[2], (p,), jnp.float32) * 0.5 + 1.0
    b_in  = jax.random.normal(ks[3], (p,), jnp.float32) * 0.1
    w1    = jax.random.normal(ks[4], (p, hidden), jnp.float32) * 0.3
    b1    = jax.random.normal(ks[5], (hidden,), jnp.float32) * 0.1
    w2    = jax.random.normal(ks[6], (hidden, q), jnp.float32) * 0.3
    b2    = jax.random.normal(ks[7], (q,), jnp.float32) * 0.1
    s_out = jax.random.normal(ks[8], (q,), jnp.float32) * 0.5 + 1.0
    b_out = jax.random.normal(ks[9], (q,), jnp.float32) * 0.1
    params = (w, s_in, b_in, w1, b1, w2, b2, s_out, b_out)

    # 1) tiny batch: single grid step, padded to one (8, 128) packed tile
    x_small = jax.random.normal(ks[0], (16, n_in), jnp.float32)
    y_small = jax.block_until_ready(gnlr_forward(x_small, *params))
    y_small_ref = gnlr_forward_ref(x_small, *params)
    assert y_small.shape == (16, q)
    assert jnp.allclose(y_small, y_small_ref, atol=1e-4, rtol=1e-4), \
        "small-batch mismatch vs reference"

    # 2) non-divisible batch with a small tile: exercises padding plus an even
    #    multi-step grid (250 packed rows -> 4 tiles of 64)
    x_big = jax.random.normal(ks[0], (2000, n_in), jnp.float32)
    y_big = jax.block_until_ready(gnlr_forward(x_big, *params, tile_m=64))
    y_big_ref = gnlr_forward_ref(x_big, *params)
    assert y_big.shape == (2000, q)
    assert jnp.allclose(y_big, y_big_ref, atol=1e-4, rtol=1e-4), \
        "large-batch mismatch vs reference"

    # 3) bf16 input/weight path (auto-enabled for >= 4096 samples; forced here),
    #    f32 accumulation -> looser tolerance
    y_bf16 = jax.block_until_ready(gnlr_forward(x_big, *params, use_bf16=True))
    assert jnp.allclose(y_bf16, y_big_ref, atol=2.5e-1, rtol=5e-2), \
        "bf16-path mismatch vs reference"

    # 4) optional bf16 output dtype (halves HBM writeback for tolerant callers)
    y_b16o = jax.block_until_ready(
        gnlr_forward(x_big, *params, use_bf16=True, out_dtype=jnp.bfloat16))
    assert y_b16o.dtype == jnp.bfloat16
    assert jnp.allclose(y_b16o.astype(jnp.float32), y_big_ref,
                        atol=2.5e-1, rtol=5e-2), "bf16-output mismatch vs reference"

    print("KERNEL_OK")
</pallas_src>

<mosaic_0001>
module attributes {stable_mosaic.version = 11 : i64} {
  func.func @gnlr_kernel(%arg0: i32, %arg1: memref<8x128xf32, #tpu.memory_space<vmem>>, %arg2: memref<128x256xf32, #tpu.memory_space<vmem>>, %arg3: memref<1x256xf32, #tpu.memory_space<vmem>>, %arg4: memref<256x128xf32, #tpu.memory_space<vmem>>, %arg5: memref<1x128xf32, #tpu.memory_space<vmem>>, %arg6: memref<8x128xf32, #tpu.memory_space<vmem>>) attributes {dimension_semantics = [#tpu.dimension_semantics<parallel>], iteration_bounds = array<i64: 1>, scalar_prefetch = 0 : i64, scratch_operands = 0 : i64, tpu.core_type = #tpu.core_type<tc>, window_params = [{transform_indices = @transform_0, window_bounds = array<i64: 8, 128>}, {pipeline_mode = #tpu.pipeline_mode<synchronous>, transform_indices = @transform_1, window_bounds = array<i64: 128, 256>}, {pipeline_mode = #tpu.pipeline_mode<synchronous>, transform_indices = @transform_2, window_bounds = array<i64: 1, 256>}, {pipeline_mode = #tpu.pipeline_mode<synchronous>, transform_indices = @transform_3, window_bounds = array<i64: 256, 128>}, {pipeline_mode = #tpu.pipeline_mode<synchronous>, transform_indices = @transform_4, window_bounds = array<i64: 1, 128>}, {transform_indices = @transform_5, window_bounds = array<i64: 8, 128>}]} {
    %c0 = arith.constant 0 : index
    %c0_0 = arith.constant 0 : index
    %0 = vector.load %arg1[%c0, %c0_0] : memref<8x128xf32, #tpu.memory_space<vmem>>, vector<8x128xf32>
    %c0_1 = arith.constant 0 : index
    %c0_2 = arith.constant 0 : index
    %1 = vector.load %arg2[%c0_1, %c0_2] : memref<128x256xf32, #tpu.memory_space<vmem>>, vector<128x256xf32>
    %cst = arith.constant dense<0.000000e+00> : vector<8x256xf32>
    %2 = tpu.matmul %0, %1, %cst {dimension_numbers = #tpu.dot_dimension_numbers<[1], [0], [0], [1], [0, 0, 1, 1], [], []>} : vector<8x128xf32>, vector<128x256xf32>, vector<8x256xf32> -> vector<8x256xf32>
    %c0_3 = arith.constant 0 : index
    %c0_4 = arith.constant 0 : index
    %3 = vector.load %arg3[%c0_3, %c0_4] : memref<1x256xf32, #tpu.memory_space<vmem>>, vector<1x256xf32>
    %4 = vector.broadcast %3 : vector<1x256xf32> to vector<8x256xf32>
    %5 = arith.addf %2, %4 : vector<8x256xf32>
    %6 = math.tanh %5 : vector<8x256xf32>
    %c0_5 = arith.constant 0 : index
    %c0_6 = arith.constant 0 : index
    %7 = vector.load %arg4[%c0_5, %c0_6] : memref<256x128xf32, #tpu.memory_space<vmem>>, vector<256x128xf32>
    %cst_7 = arith.constant dense<0.000000e+00> : vector<8x128xf32>
    %8 = tpu.matmul %6, %7, %cst_7 {dimension_numbers = #tpu.dot_dimension_numbers<[1], [0], [0], [1], [0, 0, 1, 1], [], []>} : vector<8x256xf32>, vector<256x128xf32>, vector<8x128xf32> -> vector<8x128xf32>
    %c0_8 = arith.constant 0 : index
    %c0_9 = arith.constant 0 : index
    %9 = vector.load %arg5[%c0_8, %c0_9] : memref<1x128xf32, #tpu.memory_space<vmem>>, vector<1x128xf32>
    %10 = vector.broadcast %9 : vector<1x128xf32> to vector<8x128xf32>
    %11 = arith.addf %8, %10 : vector<8x128xf32>
    %c0_10 = arith.constant 0 : index
    %c0_11 = arith.constant 0 : index
    %12 = vector.load %arg6[%c0_10, %c0_11] : memref<8x128xf32, #tpu.memory_space<vmem>>, vector<8x128xf32>
    tpu.vector_store %arg6[%c0_10, %c0_11], %11 {strides = array<i32>} : memref<8x128xf32, #tpu.memory_space<vmem>>, vector<8x128xf32>,
    return
  }
  func.func @transform_0(%arg0: i32) -> (i32, i32) {
    %c0_i32 = arith.constant 0 : i32
    %c0_i32_0 = arith.constant 0 : i32
    return %arg0, %c0_i32 : i32, i32
  }
  func.func @transform_1(%arg0: i32) -> (i32, i32) {
    %c0_i32 = arith.constant 0 : i32
    %c0_i32_0 = arith.constant 0 : i32
    %c0_i32_1 = arith.constant 0 : i32
    return %c0_i32, %c0_i32_0 : i32, i32
  }
  func.func @transform_2(%arg0: i32) -> (i32, i32) {
    %c0_i32 = arith.constant 0 : i32
    %c0_i32_0 = arith.constant 0 : i32
    %c0_i32_1 = arith.constant 0 : i32
    return %c0_i32, %c0_i32_0 : i32, i32
  }
  func.func @transform_3(%arg0: i32) -> (i32, i32) {
    %c0_i32 = arith.constant 0 : i32
    %c0_i32_0 = arith.constant 0 : i32
    %c0_i32_1 = arith.constant 0 : i32
    return %c0_i32, %c0_i32_0 : i32, i32
  }
  func.func @transform_4(%arg0: i32) -> (i32, i32) {
    %c0_i32 = arith.constant 0 : i32
    %c0_i32_0 = arith.constant 0 : i32
    %c0_i32_1 = arith.constant 0 : i32
    return %c0_i32, %c0_i32_0 : i32, i32
  }
  func.func @transform_5(%arg0: i32) -> (i32, i32) {
    %c0_i32 = arith.constant 0 : i32
    %c0_i32_0 = arith.constant 0 : i32
    return %arg0, %c0_i32 : i32, i32
  }
}

</mosaic_0001>

<bundles_post_ra>
// kernel: tile.13
= control target key start
LH: loop header
LB: loop body
LE: loop exit
PB: predicated region body
PF: predicated region fallthrough
CT: control target
= control target key end

     0   :  { %s22_s0 = inlined_call_operand.vmem [shape: f32[32], index: 0, kind: input, shape index: {}]   ;;  %s23_s1 = inlined_call_operand.vmem [shape: f32[8,32], index: 1, kind: output, shape index: {}]  }
   0x1   :  { %v4_v0 = vld [vmem:[%s22_s0] ss:$0 sm:$0xff] }
   0x2   :  { %5 = vst [vmem:[%s23_s1] sm:$0xff] %v4_v0 }

// kernel: tile.14
= control target key start
LH: loop header
LB: loop body
LE: loop exit
PB: predicated region body
PF: predicated region fallthrough
CT: control target
= control target key end

     0   :  { %s7_s6 = smov 3  ;;  %s46_s9 = smov 96   ;;  %vm4_vm0 = vcmask 261120   ;;  %vm11_vm1 = vcmask 1048320   ;;  %vm18_vm2 = vcmask 785920   ;;  %vm25_vm3 = vcmask 523520   ;;  %s77_s0 = inlined_call_operand.vmem [shape: f32[8,32], index: 0, kind: input, shape index: {}]   ;;  %s78_s1 = inlined_call_operand.vmem [shape: f32[1,256], index: 1, kind: output, shape index: {}]  }
   0x1   :  { %v39_v0 = vld [vmem:[%s77_s0 + $0x3] ss:$4 sm:%s7_s6]   ;;  %s21_s10 = smov 3  ;;  %s14_s13 = smov 3 }
   0x2   :  { %9 = vrot.lane.b32.xlu0 %v39_v0, %s46_s9  ;;  %v41_v1 = vld [vmem:[%s77_s0 + $0x1] ss:$4 sm:%s21_s10]   ;;  %s47_s14 = smov 32   ;;  %s48_s17 = smov 64  }
   0x3   :  { %23 = vrot.lane.b32.xlu1 %v41_v1, %s47_s14  ;;  %v40_v2 = vld [vmem:[%s77_s0 + $0x2] ss:$4 sm:%s14_s13]   ;;  %s2_s18 = smov 3 }
   0x4   :  { %v3_v3 = vld [vmem:[%s77_s0] ss:$4 sm:%s2_s18]  }
   0x5   :  { %5 = vst.msk [vmem:[#allocation0] ss:$8 sm:$0x3] %vm4_vm0, %v3_v3  }
   0xa   :  { %16 = vrot.lane.b32.xlu0 %v40_v2, %s48_s17 }
  0x74   :  { %v10_v4 = vpop.permute.xlu0 %9  }
  0x75   :  { %12 = vst.msk [vmem:[#allocation0] ss:$8 sm:$0x3] %vm11_vm1, %v10_v4   ;;  %v24_v5 = vpop.permute.xlu1 %23  }
  0x7c   :  { %v17_v6 = vpop.permute.xlu0 %16  }
  0x7d   :  { %19 = vst.msk [vmem:[#allocation0] ss:$8 sm:$0x3] %vm18_vm2, %v17_v6  }
  0x7e   :  { %26 = vst.msk [vmem:[#allocation0] ss:$8 sm:$0x3] %vm25_vm3, %v24_v5  }
  0x85   :  { %v29_v7 = vld [vmem:[#allocation0] sm:$0x1]  ;;  %v34_v8 = vld [vmem:[#allocation0 + $0x8] sm:$0x1] }
  0x86   :  { %32 = vst [vmem:[%s78_s1] sm:$0x1] %v29_v7 }
  0x87   :  { %42 = vst [vmem:[%s78_s1 + $0x1] sm:$0x1] %v34_v8 }

// kernel: tile.18
= control target key start
LH: loop header
LB: loop body
LE: loop exit
PB: predicated region body
PF: predicated region fallthrough
CT: control target
= control target key end

     0   :  { %s22_s0 = inlined_call_operand.vmem [shape: f32[16], index: 0, kind: input, shape index: {}]   ;;  %s23_s1 = inlined_call_operand.vmem [shape: f32[8,16], index: 1, kind: output, shape index: {}]  }
   0x1   :  { %v4_v0 = vld [vmem:[%s22_s0] ss:$0 sm:$0xff] }
   0x2   :  { %5 = vst [vmem:[%s23_s1] sm:$0xff] %v4_v0 }

// kernel: tile.19
= control target key start
LH: loop header
LB: loop body
LE: loop exit
PB: predicated region body
PF: predicated region fallthrough
CT: control target
= control target key end

     0   :  { %s67_s10 = smov 112   ;;  %s68_s11 = smov 80   ;;  %vm3_vm0 = vcmask 130048   ;;  %vm9_vm1 = vcmask 1048448   ;;  %vm15_vm2 = vcmask 917248   ;;  %vm21_vm3 = vcmask 786048   ;;  %s111_s0 = inlined_call_operand.vmem [shape: f32[8,16], index: 0, kind: input, shape index: {}]   ;;  %s112_s1 = inlined_call_operand.vmem [shape: f32[1,128], index: 1, kind: output, shape index: {}]  }
   0x1   :  { %v53_v0 = vld [vmem:[%s111_s0 + $0x7] sm:$0x1]   ;;  %v55_v1 = vld [vmem:[%s111_s0 + $0x5] sm:$0x1]   ;;  %v57_v2 = vld [vmem:[%s111_s0 + $0x3] sm:$0x1]  }
   0x2   :  { %7 = vrot.lane.b32.xlu0 %v53_v0, %s67_s10  ;;  %19 = vrot.lane.b32.xlu1 %v55_v1, %s68_s11  ;;  %s69_s14 = smov 48   ;;  %v54_v3 = vld [vmem:[%s111_s0 + $0x6] sm:$0x1]   ;;  %v56_v4 = vld [vmem:[%s111_s0 + $0x4] sm:$0x1]   ;;  %s70_s21 = smov 96  }
   0x3   :  { %31 = vrot.lane.b32.xlu2 %v57_v2, %s69_s14  ;;  %v58_v5 = vld [vmem:[%s111_s0 + $0x2] sm:$0x1]   ;;  %s71_s22 = smov 64   ;;  %s72_s23 = smov 32   ;;  %v59_v6 = vld [vmem:[%s111_s0 + $0x1] sm:$0x1]  }
   0x4   :  { %s73_s26 = smov 16   ;;  %v2_v7 = vld [vmem:[%s111_s0] sm:$0x1]   ;;  %vm27_vm4 = vcmask 654848   ;;  %vm33_vm5 = vcmask 523648   ;;  %vm39_vm6 = vcmask 392448  }
   0x5   :  { %4 = vst.msk [vmem:[#allocation0] sm:$0x1] %vm3_vm0, %v2_v7   ;;  %vm45_vm7 = vcmask 261248  }
   0xa   :  { %13 = vrot.lane.b32.xlu0 %v54_v3, %s70_s21  ;;  %25 = vrot.lane.b32.xlu1 %v56_v4, %s71_s22 }
   0xb   :  { %37 = vrot.lane.b32.xlu2 %v58_v5, %s72_s23 }
  0x12   :  { %43 = vrot.lane.b32.xlu0 %v59_v6, %s73_s26 }
  0x5d   :  { %v32_v8 = vpop.permute.xlu2 %31  }
  0x65   :  { %v38_v9 = vpop.permute.xlu2 %37  }
  0x74   :  { %v8_v10 = vpop.permute.xlu0 %7   ;;  %v20_v11 = vpop.permute.xlu1 %19  }
  0x75   :  { %10 = vst.msk [vmem:[#allocation0] sm:$0x1] %vm9_vm1, %v8_v10  }
  0x7c   :  { %v14_v12 = vpop.permute.xlu0 %13   ;;  %v26_v13 = vpop.permute.xlu1 %25  }
  0x7d   :  { %16 = vst.msk [vmem:[#allocation0] sm:$0x1] %vm15_vm2, %v14_v12  }
  0x7e   :  { %22 = vst.msk [vmem:[#allocation0] sm:$0x1] %vm21_vm3, %v20_v11  }
  0x7f   :  { %28 = vst.msk [vmem:[#allocation0] sm:$0x1] %vm27_vm4, %v26_v13  }
  0x80   :  { %34 = vst.msk [vmem:[#allocation0] sm:$0x1] %vm33_vm5, %v32_v8  }
  0x81   :  { %40 = vst.msk [vmem:[#allocation0] sm:$0x1] %vm39_vm6, %v38_v9  }
  0x84   :  { %v44_v14 = vpop.permute.xlu0 %43  }
  0x85   :  { %46 = vst.msk [vmem:[#allocation0] sm:$0x1] %vm45_vm7, %v44_v14  }
  0x8c   :  { %v49_v15 = vld [vmem:[#allocation0] sm:$0x1] }
  0x8d   :  { %52 = vst [vmem:[%s112_s1] sm:$0x1] %v49_v15 }

// kernel: gnlr_forward.1
= control target key start
LH: loop header
LB: loop body
LE: loop exit
PB: predicated region body
PF: predicated region fallthrough
CT: control target
= control target key end

     0   :  { %s421_s1 = inlined_call_operand.vmem [shape: f32[128,256], index: 1, kind: input, shape index: {}]   ;;  %s422_s3 = inlined_call_operand.vmem [shape: f32[256,128], index: 3, kind: input, shape index: {}]   ;;  %s423_s0 = inlined_call_operand.vmem [shape: f32[8,128], index: 0, kind: input, shape index: {}]   ;;  %s424_s4 = inlined_call_operand.vmem [shape: f32[1,128], index: 4, kind: input, shape index: {}]   ;;  %s425_s2 = inlined_call_operand.vmem [shape: f32[1,256], index: 2, kind: input, shape index: {}]   ;;  %s426_s5 = inlined_call_operand.vmem [shape: f32[8,128], index: 5, kind: output, shape index: {}]  }
   0x1   :  { %v51_v0 = vld [vmem:[%s421_s1 + $0xf0] sm:$0xff]  ;;  %v49_v1 = vld [vmem:[%s421_s1 + $0xe0] sm:$0xff]  ;;  %v52_v2 = vld [vmem:[%s421_s1 + $0xf8] sm:$0xff] }
   0x2   :  { %59 = vmatpush.msra.mxu0 %v51_v0  ;;  %79 = vmatpush.msra.mxu1 %v52_v2  ;;  %v50_v3 = vld [vmem:[%s421_s1 + $0xe8] sm:$0xff]  ;;  %v47_v4 = vld [vmem:[%s421_s1 + $0xd0] sm:$0xff]  ;;  %v48_v5 = vld [vmem:[%s421_s1 + $0xd8] sm:$0xff] }
   0x3   :  { %v45_v6 = vld [vmem:[%s421_s1 + $0xc0] sm:$0xff]  ;;  %v46_v7 = vld [vmem:[%s421_s1 + $0xc8] sm:$0xff]  ;;  %v43_v8 = vld [vmem:[%s421_s1 + $0xb0] sm:$0xff] }
   0x4   :  { %60 = vmatpush.msra.mxu0 %v49_v1  ;;  %80 = vmatpush.msra.mxu1 %v50_v3  ;;  %v44_v9 = vld [vmem:[%s421_s1 + $0xb8] sm:$0xff]  ;;  %v41_v10 = vld [vmem:[%s421_s1 + $0xa0] sm:$0xff]  ;;  %v42_v11 = vld [vmem:[%s421_s1 + $0xa8] sm:$0xff] }
   0x5   :  { %v39_v12 = vld [vmem:[%s421_s1 + $0x90] sm:$0xff]  ;;  %v40_v13 = vld [vmem:[%s421_s1 + $0x98] sm:$0xff]  ;;  %v37_v17 = vld [vmem:[%s421_s1 + $0x80] sm:$0xff] }
   0x6   :  { %61 = vmatpush.msra.mxu0 %v47_v4  ;;  %81 = vmatpush.msra.mxu1 %v48_v5  ;;  %v116_v14 = vld [vmem:[%s422_s3 + $0x78] sm:$0xff]  ;;  %v115_v15 = vld [vmem:[%s422_s3 + $0x70] sm:$0xff]  ;;  %v38_v18 = vld [vmem:[%s421_s1 + $0x88] sm:$0xff] }
   0x7   :  { %v132_v16 = vld [vmem:[%s422_s3 + $0xf8] sm:$0xff]  ;;  %137 = vmatpush.msra.mxu2 %v116_v14  ;;  %v131_v19 = vld [vmem:[%s422_s3 + $0xf0] sm:$0xff]  ;;  %v114_v20 = vld [vmem:[%s422_s3 + $0x68] sm:$0xff] }
   0x8   :  { %62 = vmatpush.msra.mxu0 %v45_v6  ;;  %82 = vmatpush.msra.mxu1 %v46_v7  ;;  %v130_v21 = vld [vmem:[%s422_s3 + $0xe8] sm:$0xff]  ;;  %v35_v22 = vld [vmem:[%s421_s1 + $0x70] sm:$0xff]  ;;  %v36_v23 = vld [vmem:[%s421_s1 + $0x78] sm:$0xff] }
   0x9   :  { %157 = vmatpush.msra.mxu3 %v132_v16  ;;  %138 = vmatpush.msra.mxu2 %v115_v15  ;;  %v113_v24 = vld [vmem:[%s422_s3 + $0x60] sm:$0xff]  ;;  %v34_v27 = vld [vmem:[%s421_s1 + $0x68] sm:$0xff]  ;;  %v112_v28 = vld [vmem:[%s422_s3 + $0x58] sm:$0xff] }
   0xa   :  { %63 = vmatpush.msra.mxu0 %v43_v8  ;;  %83 = vmatpush.msra.mxu1 %v44_v9  ;;  %v129_v25 = vld [vmem:[%s422_s3 + $0xe0] sm:$0xff]  ;;  %v128_v29 = vld [vmem:[%s422_s3 + $0xd8] sm:$0xff]  ;;  %v31_v30 = vld [vmem:[%s421_s1 + $0x50] sm:$0xff] }
   0xb   :  { %158 = vmatpush.msra.mxu3 %v131_v19  ;;  %v33_v26 = vld [vmem:[%s421_s1 + $0x60] sm:$0xff]  ;;  %139 = vmatpush.msra.mxu2 %v114_v20  ;;  %v32_v31 = vld [vmem:[%s421_s1 + $0x58] sm:$0xff]  ;;  %v111_v32 = vld [vmem:[%s422_s3 + $0x50] sm:$0xff] }
   0xc   :  { %64 = vmatpush.msra.mxu0 %v41_v10  ;;  %84 = vmatpush.msra.mxu1 %v42_v11  ;;  %v127_v33 = vld [vmem:[%s422_s3 + $0xd0] sm:$0xff]  ;;  %v29_v34 = vld [vmem:[%s421_s1 + $0x40] sm:$0xff]  ;;  %v30_v35 = vld [vmem:[%s421_s1 + $0x48] sm:$0xff] }
   0xd   :  { %159 = vmatpush.msra.mxu3 %v130_v21  ;;  %140 = vmatpush.msra.mxu2 %v113_v24  ;;  %v110_v36 = vld [vmem:[%s422_s3 + $0x48] sm:$0xff]  ;;  %v27_v38 = vld [vmem:[%s421_s1 + $0x30] sm:$0xff]  ;;  %v28_v39 = vld [vmem:[%s421_s1 + $0x38] sm:$0xff] }
   0xe   :  { %65 = vmatpush.msra.mxu0 %v39_v12  ;;  %85 = vmatpush.msra.mxu1 %v40_v13  ;;  %v126_v37 = vld [vmem:[%s422_s3 + $0xc8] sm:$0xff]  ;;  %v109_v40 = vld [vmem:[%s422_s3 + $0x40] sm:$0xff]  ;;  %v108_v44 = vld [vmem:[%s422_s3 + $0x38] sm:$0xff] }
   0xf   :  { %160 = vmatpush.msra.mxu3 %v129_v25  ;;  %141 = vmatpush.msra.mxu2 %v112_v28  ;;  %v125_v41 = vld [vmem:[%s422_s3 + $0xc0] sm:$0xff]  ;;  %v26_v43 = vld [vmem:[%s421_s1 + $0x28] sm:$0xff]  ;;  %v124_v45 = vld [vmem:[%s422_s3 + $0xb8] sm:$0xff] }
  0x10   :  { %66 = vmatpush.msra.mxu0 %v37_v17  ;;  %86 = vmatpush.msra.mxu1 %v38_v18  ;;  %v25_v42 = vld [vmem:[%s421_s1 + $0x20] sm:$0xff]  ;;  %v23_v46 = vld [vmem:[%s421_s1 + $0x10] sm:$0xff]  ;;  %v24_v47 = vld [vmem:[%s421_s1 + $0x18] sm:$0xff] }
  0x11   :  { %161 = vmatpush.msra.mxu3 %v128_v29  ;;  %142 = vmatpush.msra.mxu2 %v111_v32  ;;  %v107_v48 = vld [vmem:[%s422_s3 + $0x30] sm:$0xff]  ;;  %v21_v50 = vld [vmem:[%s421_s1] sm:$0xff]  ;;  %v22_v51 = vld [vmem:[%s421_s1 + $0x8] sm:$0xff] }
  0x12   :  { %67 = vmatpush.msra.mxu0 %v35_v22  ;;  %87 = vmatpush.msra.mxu1 %v36_v23  ;;  %v123_v49 = vld [vmem:[%s422_s3 + $0xb0] sm:$0xff]  ;;  %v20_v52 = vld [vmem:[%s423_s0] sm:$0xff]  ;;  %v106_v53 = vld [vmem:[%s422_s3 + $0x28] sm:$0xff] }
  0x13   :  { %162 = vmatpush.msra.mxu3 %v127_v33  ;;  %143 = vmatpush.msra.mxu2 %v110_v36  ;;  %v105_v54 = vld [vmem:[%s422_s3 + $0x20] sm:$0xff]  ;;  %v122_v55 = vld [vmem:[%s422_s3 + $0xa8] sm:$0xff]  ;;  %v104_v56 = vld [vmem:[%s422_s3 + $0x18] sm:$0xff] }
  0x14   :  { %68 = vmatpush.msra.mxu0 %v33_v26  ;;  %88 = vmatpush.msra.mxu1 %v34_v27  ;;  %v121_v57 = vld [vmem:[%s422_s3 + $0xa0] sm:$0xff]  ;;  %v103_v58 = vld [vmem:[%s422_s3 + $0x10] sm:$0xff]  ;;  %v120_v59 = vld [vmem:[%s422_s3 + $0x98] sm:$0xff] }
  0x15   :  { %163 = vmatpush.msra.mxu3 %v126_v37  ;;  %144 = vmatpush.msra.mxu2 %v109_v40  ;;  %v102_v60 = vld [vmem:[%s422_s3 + $0x8] sm:$0xff]  ;;  %v119_v61 = vld [vmem:[%s422_s3 + $0x90] sm:$0xff]  ;;  %v101_v62 = vld [vmem:[%s422_s3] sm:$0xff] }
  0x16   :  { %69 = vmatpush.msra.mxu0 %v31_v30  ;;  %89 = vmatpush.msra.mxu1 %v32_v31  ;;  %v118_v63 = vld [vmem:[%s422_s3 + $0x88] sm:$0xff]  ;;  %v117_v0 = vld [vmem:[%s422_s3 + $0x80] sm:$0xff] }
  0x17   :  { %164 = vmatpush.msra.mxu3 %v125_v41  ;;  %145 = vmatpush.msra.mxu2 %v108_v44  ;;  %v53_v1 = vld [vmem:[%s425_s2] sm:$0x3] }
  0x18   :  { %70 = vmatpush.msra.mxu0 %v29_v34  ;;  %90 = vmatpush.msra.mxu1 %v30_v35  ;;  %v55_v2 = vperm.slane %v53_v1, 0  ;;  %v56_v3 = vperm.slane %v53_v1, 1  ;;  %v182_v10 = vld [vmem:[%s424_s4] ss:$0 sm:$0xff] }
  0x19   :  { %165 = vmatpush.msra.mxu3 %v124_v45  ;;  %146 = vmatpush.msra.mxu2 %v107_v48 }
  0x1a   :  { %71 = vmatpush.msra.mxu0 %v27_v38  ;;  %91 = vmatpush.msra.mxu1 %v28_v39 }
  0x1b   :  { %166 = vmatpush.msra.mxu3 %v123_v49  ;;  %147 = vmatpush.msra.mxu2 %v106_v53 }
  0x1c   :  { %72 = vmatpush.msra.mxu0 %v25_v42  ;;  %92 = vmatpush.msra.mxu1 %v26_v43 }
  0x1d   :  { %148 = vmatpush.msra.mxu2 %v105_v54  ;;  %167 = vmatpush.msra.mxu3 %v122_v55 }
  0x1e   :  { %73 = vmatpush.msra.mxu0 %v23_v46  ;;  %93 = vmatpush.msra.mxu1 %v24_v47 }
  0x1f   :  { %149 = vmatpush.msra.mxu2 %v104_v56  ;;  %168 = vmatpush.msra.mxu3 %v121_v57 }
  0x20   :  { %74 = vmatpush.msra.mxu0 %v21_v50  ;;  %94 = vmatpush.msra.mxu1 %v22_v51 }
  0x21   :  { %75 = vmatmul.f32.vlgmr.msra.gmra.mxu0 %v20_v52  ;;  %95 = vmatmul.f32.vlgmr.msra.gmra.mxu1 %v20_v52 }
  0x22   :  { %150 = vmatpush.msra.mxu2 %v103_v58  ;;  %169 = vmatpush.msra.mxu3 %v120_v59 }
  0x24   :  { %151 = vmatpush.msra.mxu2 %v102_v60  ;;  %170 = vmatpush.msra.mxu3 %v119_v61 }
  0x26   :  { %152 = vmatpush.msra.mxu2 %v101_v62  ;;  %171 = vmatpush.msra.mxu3 %v118_v63 }
  0x28   :  { %172 = vmatpush.msra.mxu3 %v117_v0 }
  0x9e   :  { %v76_v4 = vpop.f32.mrf.mxu0  ;;  %v96_v5 = vpop.f32.mrf.mxu1 }
  0x9f   :  { %v77_v6 = vadd.f32 %v76_v4, %v55_v2  ;;  %v97_v7 = vadd.f32 %v96_v5, %v56_v3 }
  0xa1   :  { %183 = vtanh.f32 %v77_v6 }
  0xa2   :  { %185 = vtanh.f32 %v97_v7 }
  0xa7   :  { %v184_v8 = vpop.eup %183 }
  0xa8   :  { %v186_v9 = vpop.eup %185  ;;  %153 = vmatmul.f32.vlgmr.msra.gmra.mxu2 %v184_v8 }
  0xa9   :  { %173 = vmatmul.f32.vlgmr.msra.gmra.mxu3 %v186_v9 }
 0x12b   :  { %v154_v11 = vpop.f32.mrf.mxu2 }
 0x12c   :  { %v155_v12 = vadd.f32 %v182_v10, %v154_v11  ;;  %v174_v13 = vpop.f32.mrf.mxu3 }
 0x12e   :  { %v175_v14 = vadd.f32 %v174_v13, %v155_v12 }
 0x130   :  { %177 = vst [vmem:[%s426_s5] sm:$0xff] %v175_v14 }

</bundles_post_ra>
